<compile_context>
chip_gen: v5e
topology: v5e:2x2
jax: 0.10.0
libtpu: 0.0.40
codegen_flags: <defaults>
</compile_context>

<pallas_src>
import functools

import jax
import jax.numpy as jnp
from jax.experimental import pallas as pl
from jax.experimental.pallas import tpu as pltpu


_TM_MAX = 512  # rows of the M (=N*Ho*Wo) axis per grid step


def _round_up(x, m):
    return (x + m - 1) // m * m


def _pick_tm(m):
    if m >= _TM_MAX:
        return _TM_MAX
    return _round_up(m, 8)          # satisfy the (8, 128) sublane constraint


def _pad_rows(a, rows):
    if a.shape[0] == rows:
        return a
    return jnp.pad(a, ((0, rows - a.shape[0]), (0, 0)))


# ----------------------------- Pallas kernels ------------------------------

def _conv_mm_kernel(x_ref, w_ref, b_ref, o_ref, *, relu):
    """o = [relu](x @ w + b).  bf16 MXU operands, f32 accumulate/epilogue."""
    acc = jnp.dot(x_ref[...], w_ref[...], preferred_element_type=jnp.float32)
    acc = acc + b_ref[...]
    if relu:
        acc = jnp.maximum(acc, 0.0)
    o_ref[...] = acc


def _residual_kernel(cols_ref, x_ref, w3_ref, w1_ref, o_ref, *, final_relu):
    """Fused residual block on one M-tile.

    cols = im2col_3x3(x) in bf16.  Computes
        out = x + ReLU(ReLU(cols) @ w3) @ w1          (+ optional final ReLU)
    keeping the narrow (tm, R) intermediate entirely in VMEM/vregs.
    """
    cols = jnp.maximum(cols_ref[...], 0)                       # leading ReLU
    h = jnp.dot(cols, w3_ref[...], preferred_element_type=jnp.float32)
    h = jnp.maximum(h, 0.0)                                    # f32 VPU ReLU
    h = h.astype(w1_ref.dtype)                                 # bf16 for MXU
    out = x_ref[...] + jnp.dot(h, w1_ref[...],
                               preferred_element_type=jnp.float32)
    if final_relu:
        out = jnp.maximum(out, 0.0)
    o_ref[...] = out


# --------------------------- kernel wrappers --------------------------------

def _conv_matmul(cols, wmat, bvec, relu):
    m, k = cols.shape
    n = wmat.shape[1]
    tm = _pick_tm(m)
    mp = _round_up(m, tm)
    cols = _pad_rows(cols, mp)
    cost = pl.CostEstimate(
        flops=2 * mp * k * n, transcendentals=0,
        bytes_accessed=mp * k * 2 + k * n * 2 + 4 * n + 4 * mp * n)
    out = pl.pallas_call(
        functools.partial(_conv_mm_kernel, relu=relu),
        out_shape=jax.ShapeDtypeStruct((mp, n), jnp.float32),
        grid=(mp // tm,),
        in_specs=[pl.BlockSpec((tm, k), lambda i: (i, 0)),
                  pl.BlockSpec((k, n), lambda i: (0, 0)),
                  pl.BlockSpec((1, n), lambda i: (0, 0))],
        out_specs=pl.BlockSpec((tm, n), lambda i: (i, 0)),
        compiler_params=pltpu.CompilerParams(
            dimension_semantics=("parallel",)),
        cost_estimate=cost,
    )(cols, wmat, bvec)
    return out[:m] if mp != m else out


def _residual_call(cols, x_flat, w3mat, w1mat, final_relu):
    m, k3 = cols.shape
    c = x_flat.shape[1]
    r = w3mat.shape[1]
    tm = _pick_tm(m)
    mp = _round_up(m, tm)
    cols = _pad_rows(cols, mp)
    x_flat = _pad_rows(x_flat, mp)
    cost = pl.CostEstimate(
        flops=2 * mp * k3 * r + 2 * mp * r * c, transcendentals=0,
        bytes_accessed=(mp * k3 * 2 + 4 * mp * c + k3 * r * 2 + r * c * 2
                        + 4 * mp * c))
    out = pl.pallas_call(
        functools.partial(_residual_kernel, final_relu=final_relu),
        out_shape=jax.ShapeDtypeStruct((mp, c), jnp.float32),
        grid=(mp // tm,),
        in_specs=[pl.BlockSpec((tm, k3), lambda i: (i, 0)),
                  pl.BlockSpec((tm, c), lambda i: (i, 0)),
                  pl.BlockSpec((k3, r), lambda i: (0, 0)),
                  pl.BlockSpec((r, c), lambda i: (0, 0))],
        out_specs=pl.BlockSpec((tm, c), lambda i: (i, 0)),
        input_output_aliases={1: 0},   # reuse the skip tensor's HBM buffer
        compiler_params=pltpu.CompilerParams(
            dimension_semantics=("parallel",)),
        cost_estimate=cost,
    )(cols, x_flat, w3mat, w1mat)
    return out[:m] if mp != m else out


# ------------------------------- conv glue ----------------------------------

def _im2col(x, k, stride, pad):
    """x: NHWC.  Returns (N*Ho*Wo, k*k*C) patch matrix ordered (kh, kw, C)."""
    x = jnp.pad(x, ((0, 0), (pad, pad), (pad, pad), (0, 0)))
    n, h, w, c = x.shape
    ho = (h - k) // stride + 1
    wo = (w - k) // stride + 1
    cols = []
    for di in range(k):
        for dj in range(k):
            cols.append(
                x[:, di:di + stride * ho:stride, dj:dj + stride * wo:stride, :])
    cols = jnp.concatenate(cols, axis=-1)          # (N, Ho, Wo, k*k*C)
    return cols.reshape(n * ho * wo, k * k * c), (n, ho, wo)


def conv2d(x, wmat, bvec, *, k, stride, pad, relu):
    """x: NHWC f32; wmat: pre-laid-out (k*k*Cin, Cout) bf16; bvec: (1, Cout)."""
    cout = wmat.shape[1]
    cols, (n, ho, wo) = _im2col(x.astype(jnp.bfloat16), k, stride, pad)
    out = _conv_matmul(cols, wmat, bvec, relu)
    return out.reshape(n, ho, wo, cout)


def residual_block(x, w3mat, w1mat, *, final_relu):
    """x + Conv1x1(ReLU(Conv3x3(ReLU(x)))) as a single fused kernel call."""
    n, h, w, c = x.shape
    cols, _ = _im2col(x.astype(jnp.bfloat16), 3, 1, 1)
    out = _residual_call(cols, x.reshape(n * h * w, c), w3mat, w1mat,
                         final_relu)
    return out.reshape(n, h, w, c)


# ------------------------------- Encoder -------------------------------------

def init_encoder_params(key, in_channels, hidden_units, num_layers,
                        residual_hidden_units):
    """PyTorch-Conv2d-style uniform init (raw OIHW weights), number_pre_conv=4."""
    def uinit(k, shape, fan_in):
        bound = 1.0 / jnp.sqrt(float(fan_in))
        return jax.random.uniform(k, shape, jnp.float32, -bound, bound)

    ks = iter(jax.random.split(key, 6 + 2 * num_layers))
    h2 = hidden_units // 2
    p = {
        "w0": uinit(next(ks), (h2, in_channels, 4, 4), in_channels * 16),
        "b0": uinit(next(ks), (h2,), in_channels * 16),
        "w1": uinit(next(ks), (hidden_units, h2, 4, 4), h2 * 16),
        "b1": uinit(next(ks), (hidden_units,), h2 * 16),
        "w2": uinit(next(ks), (hidden_units, hidden_units, 3, 3),
                    hidden_units * 9),
        "b2": uinit(next(ks), (hidden_units,), hidden_units * 9),
        "res": [],
    }
    for _ in range(num_layers):
        w3 = uinit(next(ks), (residual_hidden_units, hidden_units, 3, 3),
                   hidden_units * 9)
        w1 = uinit(next(ks), (hidden_units, residual_hidden_units, 1, 1),
                   residual_hidden_units)
        p["res"].append((w3, w1))
    return p


def prepare_encoder_params(p):
    """One-time weight re-layout: OIHW -> (kh*kw*Cin, Cout) bf16, bias (1,N) f32."""
    def wmat(w):
        cout, cin, kh, kw = w.shape
        return (jnp.transpose(w, (2, 3, 1, 0))
                .reshape(kh * kw * cin, cout).astype(jnp.bfloat16))

    def bvec(b):
        return b.reshape(1, -1).astype(jnp.float32)

    return {
        "w0": wmat(p["w0"]), "b0": bvec(p["b0"]),
        "w1": wmat(p["w1"]), "b1": bvec(p["b1"]),
        "w2": wmat(p["w2"]), "b2": bvec(p["b2"]),
        "res": [(wmat(w3), wmat(w1)) for (w3, w1) in p["res"]],
    }


@jax.jit
def encoder_forward(params, x_nchw):
    """number_pre_conv == 4 variant of Encoder.  Input / output are NCHW f32."""
    x = jnp.transpose(x_nchw, (0, 2, 3, 1)).astype(jnp.float32)  # -> NHWC
    n_res = len(params["res"])
    x = conv2d(x, params["w0"], params["b0"], k=4, stride=2, pad=1, relu=True)
    x = conv2d(x, params["w1"], params["b1"], k=4, stride=2, pad=1, relu=True)
    x = conv2d(x, params["w2"], params["b2"], k=3, stride=1, pad=1,
               relu=(n_res == 0))        # fuse the final ReLU here if no blocks
    for idx, (w3, w1) in enumerate(params["res"]):
        x = residual_block(x, w3, w1, final_relu=(idx == n_res - 1))
    return jnp.transpose(x, (0, 3, 1, 2))                        # -> NCHW


# --------------------------- pure-JAX reference ------------------------------

def _conv_ref(x, w, b, stride, pad):
    out = jax.lax.conv_general_dilated(
        x, w, (stride, stride), [(pad, pad), (pad, pad)],
        dimension_numbers=("NCHW", "OIHW", "NCHW"))
    if b is not None:
        out = out + b[None, :, None, None]
    return out


def encoder_ref(params, x):
    x = jax.nn.relu(_conv_ref(x, params["w0"], params["b0"], 2, 1))
    x = jax.nn.relu(_conv_ref(x, params["w1"], params["b1"], 2, 1))
    x = _conv_ref(x, params["w2"], params["b2"], 1, 1)
    for (w3, w1) in params["res"]:
        h = jax.nn.relu(x)
        h = jax.nn.relu(_conv_ref(h, w3, None, 1, 1))
        x = x + _conv_ref(h, w1, None, 1, 0)
    return jax.nn.relu(x)


# ----------------------------------- main ------------------------------------

if __name__ == "__main__":
    key = jax.random.PRNGKey(0)
    in_channels, hidden_units = 4, 32
    num_layers, residual_hidden_units = 2, 8

    raw = init_encoder_params(key, in_channels, hidden_units,
                              num_layers, residual_hidden_units)
    params = prepare_encoder_params(raw)        # one-time weight re-layout
    x = jax.random.normal(jax.random.fold_in(key, 99),
                          (2, in_channels, 16, 16), jnp.float32)

    y = jax.block_until_ready(encoder_forward(params, x))
    assert y.shape == (2, hidden_units, 4, 4), y.shape

    y_ref = jax.block_until_ready(encoder_ref(raw, x))
    # bf16 MXU operands (f32 accumulation) -> loosened tolerance vs f32 ref.
    max_err = float(jnp.max(jnp.abs(y - y_ref)))
    assert jnp.allclose(y, y_ref, atol=5e-2, rtol=5e-2), max_err

    print("KERNEL_OK")
</pallas_src>

<mosaic_0001>
module attributes {stable_mosaic.version = 11 : i64} {
  func.func @_conv_mm_kernel(%arg0: i32, %arg1: memref<128x64xbf16, #tpu.memory_space<vmem>>, %arg2: memref<64x16xbf16, #tpu.memory_space<vmem>>, %arg3: memref<1x16xf32, #tpu.memory_space<vmem>>, %arg4: memref<128x16xf32, #tpu.memory_space<vmem>>) attributes {dimension_semantics = [#tpu.dimension_semantics<parallel>], iteration_bounds = array<i64: 1>, scalar_prefetch = 0 : i64, scratch_operands = 0 : i64, tpu.core_type = #tpu.core_type<tc>, window_params = [{transform_indices = @transform_0, window_bounds = array<i64: 128, 64>}, {pipeline_mode = #tpu.pipeline_mode<synchronous>, transform_indices = @transform_1, window_bounds = array<i64: 64, 16>}, {pipeline_mode = #tpu.pipeline_mode<synchronous>, transform_indices = @transform_2, window_bounds = array<i64: 1, 16>}, {transform_indices = @transform_3, window_bounds = array<i64: 128, 16>}]} {
    %c0 = arith.constant 0 : index
    %c0_0 = arith.constant 0 : index
    %0 = vector.load %arg1[%c0, %c0_0] : memref<128x64xbf16, #tpu.memory_space<vmem>>, vector<128x64xbf16>
    %c0_1 = arith.constant 0 : index
    %c0_2 = arith.constant 0 : index
    %1 = vector.load %arg2[%c0_1, %c0_2] : memref<64x16xbf16, #tpu.memory_space<vmem>>, vector<64x16xbf16>
    %cst = arith.constant dense<0.000000e+00> : vector<128x16xf32>
    %2 = tpu.matmul %0, %1, %cst {dimension_numbers = #tpu.dot_dimension_numbers<[1], [0], [0], [1], [0, 0, 1, 1], [], []>} : vector<128x64xbf16>, vector<64x16xbf16>, vector<128x16xf32> -> vector<128x16xf32>
    %c0_3 = arith.constant 0 : index
    %c0_4 = arith.constant 0 : index
    %3 = vector.load %arg3[%c0_3, %c0_4] : memref<1x16xf32, #tpu.memory_space<vmem>>, vector<1x16xf32>
    %4 = vector.broadcast %3 : vector<1x16xf32> to vector<128x16xf32>
    %5 = arith.addf %2, %4 : vector<128x16xf32>
    %cst_5 = arith.constant 0.000000e+00 : f32
    %6 = vector.broadcast %cst_5 : f32 to vector<128x16xf32>
    %7 = arith.maximumf %5, %6 : vector<128x16xf32>
    %c0_6 = arith.constant 0 : index
    %c0_7 = arith.constant 0 : index
    %8 = vector.load %arg4[%c0_6, %c0_7] : memref<128x16xf32, #tpu.memory_space<vmem>>, vector<128x16xf32>
    tpu.vector_store %arg4[%c0_6, %c0_7], %7 {strides = array<i32>} : memref<128x16xf32, #tpu.memory_space<vmem>>, vector<128x16xf32>,
    return
  }
  func.func @transform_0(%arg0: i32) -> (i32, i32) {
    %c0_i32 = arith.constant 0 : i32
    %c0_i32_0 = arith.constant 0 : i32
    return %arg0, %c0_i32 : i32, i32
  }
  func.func @transform_1(%arg0: i32) -> (i32, i32) {
    %c0_i32 = arith.constant 0 : i32
    %c0_i32_0 = arith.constant 0 : i32
    %c0_i32_1 = arith.constant 0 : i32
    return %c0_i32, %c0_i32_0 : i32, i32
  }
  func.func @transform_2(%arg0: i32) -> (i32, i32) {
    %c0_i32 = arith.constant 0 : i32
    %c0_i32_0 = arith.constant 0 : i32
    %c0_i32_1 = arith.constant 0 : i32
    return %c0_i32, %c0_i32_0 : i32, i32
  }
  func.func @transform_3(%arg0: i32) -> (i32, i32) {
    %c0_i32 = arith.constant 0 : i32
    %c0_i32_0 = arith.constant 0 : i32
    return %arg0, %c0_i32 : i32, i32
  }
}

module attributes {stable_mosaic.version = 11 : i64} {
  func.func @_conv_mm_kernel(%arg0: i32, %arg1: memref<32x256xbf16, #tpu.memory_space<vmem>>, %arg2: memref<256x32xbf16, #tpu.memory_space<vmem>>, %arg3: memref<1x32xf32, #tpu.memory_space<vmem>>, %arg4: memref<32x32xf32, #tpu.memory_space<vmem>>) attributes {dimension_semantics = [#tpu.dimension_semantics<parallel>], iteration_bounds = array<i64: 1>, scalar_prefetch = 0 : i64, scratch_operands = 0 : i64, tpu.core_type = #tpu.core_type<tc>, window_params = [{transform_indices = @transform_0, window_bounds = array<i64: 32, 256>}, {pipeline_mode = #tpu.pipeline_mode<synchronous>, transform_indices = @transform_1, window_bounds = array<i64: 256, 32>}, {pipeline_mode = #tpu.pipeline_mode<synchronous>, transform_indices = @transform_2, window_bounds = array<i64: 1, 32>}, {transform_indices = @transform_3, window_bounds = array<i64: 32, 32>}]} {
    %c0 = arith.constant 0 : index
    %c0_0 = arith.constant 0 : index
    %0 = vector.load %arg1[%c0, %c0_0] : memref<32x256xbf16, #tpu.memory_space<vmem>>, vector<32x256xbf16>
    %c0_1 = arith.constant 0 : index
    %c0_2 = arith.constant 0 : index
    %1 = vector.load %arg2[%c0_1, %c0_2] : memref<256x32xbf16, #tpu.memory_space<vmem>>, vector<256x32xbf16>
    %cst = arith.constant dense<0.000000e+00> : vector<32x32xf32>
    %2 = tpu.matmul %0, %1, %cst {dimension_numbers = #tpu.dot_dimension_numbers<[1], [0], [0], [1], [0, 0, 1, 1], [], []>} : vector<32x256xbf16>, vector<256x32xbf16>, vector<32x32xf32> -> vector<32x32xf32>
    %c0_3 = arith.constant 0 : index
    %c0_4 = arith.constant 0 : index
    %3 = vector.load %arg3[%c0_3, %c0_4] : memref<1x32xf32, #tpu.memory_space<vmem>>, vector<1x32xf32>
    %4 = vector.broadcast %3 : vector<1x32xf32> to vector<32x32xf32>
    %5 = arith.addf %2, %4 : vector<32x32xf32>
    %cst_5 = arith.constant 0.000000e+00 : f32
    %6 = vector.broadcast %cst_5 : f32 to vector<32x32xf32>
    %7 = arith.maximumf %5, %6 : vector<32x32xf32>
    %c0_6 = arith.constant 0 : index
    %c0_7 = arith.constant 0 : index
    %8 = vector.load %arg4[%c0_6, %c0_7] : memref<32x32xf32, #tpu.memory_space<vmem>>, vector<32x32xf32>
    tpu.vector_store %arg4[%c0_6, %c0_7], %7 {strides = array<i32>} : memref<32x32xf32, #tpu.memory_space<vmem>>, vector<32x32xf32>,
    return
  }
  func.func @transform_0(%arg0: i32) -> (i32, i32) {
    %c0_i32 = arith.constant 0 : i32
    %c0_i32_0 = arith.constant 0 : i32
    return %arg0, %c0_i32 : i32, i32
  }
  func.func @transform_1(%arg0: i32) -> (i32, i32) {
    %c0_i32 = arith.constant 0 : i32
    %c0_i32_0 = arith.constant 0 : i32
    %c0_i32_1 = arith.constant 0 : i32
    return %c0_i32, %c0_i32_0 : i32, i32
  }
  func.func @transform_2(%arg0: i32) -> (i32, i32) {
    %c0_i32 = arith.constant 0 : i32
    %c0_i32_0 = arith.constant 0 : i32
    %c0_i32_1 = arith.constant 0 : i32
    return %c0_i32, %c0_i32_0 : i32, i32
  }
  func.func @transform_3(%arg0: i32) -> (i32, i32) {
    %c0_i32 = arith.constant 0 : i32
    %c0_i32_0 = arith.constant 0 : i32
    return %arg0, %c0_i32 : i32, i32
  }
}

module attributes {stable_mosaic.version = 11 : i64} {
  func.func @_residual_kernel(%arg0: i32, %arg1: memref<32x288xbf16, #tpu.memory_space<vmem>>, %arg2: memref<32x32xf32, #tpu.memory_space<vmem>>, %arg3: memref<288x8xbf16, #tpu.memory_space<vmem>>, %arg4: memref<8x32xbf16, #tpu.memory_space<vmem>>, %arg5: memref<32x32xf32, #tpu.memory_space<vmem>>) attributes {dimension_semantics = [#tpu.dimension_semantics<parallel>], iteration_bounds = array<i64: 1>, scalar_prefetch = 0 : i64, scratch_operands = 0 : i64, tpu.core_type = #tpu.core_type<tc>, window_params = [{transform_indices = @transform_0, window_bounds = array<i64: 32, 288>}, {transform_indices = @transform_1, window_bounds = array<i64: 32, 32>}, {pipeline_mode = #tpu.pipeline_mode<synchronous>, transform_indices = @transform_2, window_bounds = array<i64: 288, 8>}, {pipeline_mode = #tpu.pipeline_mode<synchronous>, transform_indices = @transform_3, window_bounds = array<i64: 8, 32>}, {transform_indices = @transform_4, window_bounds = array<i64: 32, 32>}]} {
    %c0 = arith.constant 0 : index
    %c0_0 = arith.constant 0 : index
    %0 = vector.load %arg1[%c0, %c0_0] : memref<32x288xbf16, #tpu.memory_space<vmem>>, vector<32x288xbf16>
    %cst = arith.constant 0.000000e+00 : bf16
    %1 = vector.broadcast %cst : bf16 to vector<32x288xbf16>
    %2 = arith.maximumf %0, %1 : vector<32x288xbf16>
    %c0_1 = arith.constant 0 : index
    %c0_2 = arith.constant 0 : index
    %3 = vector.load %arg3[%c0_1, %c0_2] : memref<288x8xbf16, #tpu.memory_space<vmem>>, vector<288x8xbf16>
    %cst_3 = arith.constant dense<0.000000e+00> : vector<32x8xf32>
    %4 = tpu.matmul %2, %3, %cst_3 {dimension_numbers = #tpu.dot_dimension_numbers<[1], [0], [0], [1], [0, 0, 1, 1], [], []>} : vector<32x288xbf16>, vector<288x8xbf16>, vector<32x8xf32> -> vector<32x8xf32>
    %cst_4 = arith.constant 0.000000e+00 : f32
    %5 = vector.broadcast %cst_4 : f32 to vector<32x8xf32>
    %6 = arith.maximumf %4, %5 : vector<32x8xf32>
    %7 = arith.truncf %6 : vector<32x8xf32> to vector<32x8xbf16>
    %c0_5 = arith.constant 0 : index
    %c0_6 = arith.constant 0 : index
    %8 = vector.load %arg2[%c0_5, %c0_6] : memref<32x32xf32, #tpu.memory_space<vmem>>, vector<32x32xf32>
    %c0_7 = arith.constant 0 : index
    %c0_8 = arith.constant 0 : index
    %9 = vector.load %arg4[%c0_7, %c0_8] : memref<8x32xbf16, #tpu.memory_space<vmem>>, vector<8x32xbf16>
    %cst_9 = arith.constant dense<0.000000e+00> : vector<32x32xf32>
    %10 = tpu.matmul %7, %9, %cst_9 {dimension_numbers = #tpu.dot_dimension_numbers<[1], [0], [0], [1], [0, 0, 1, 1], [], []>} : vector<32x8xbf16>, vector<8x32xbf16>, vector<32x32xf32> -> vector<32x32xf32>
    %11 = arith.addf %8, %10 : vector<32x32xf32>
    %c0_10 = arith.constant 0 : index
    %c0_11 = arith.constant 0 : index
    %12 = vector.load %arg5[%c0_10, %c0_11] : memref<32x32xf32, #tpu.memory_space<vmem>>, vector<32x32xf32>
    tpu.vector_store %arg5[%c0_10, %c0_11], %11 {strides = array<i32>} : memref<32x32xf32, #tpu.memory_space<vmem>>, vector<32x32xf32>,
    return
  }
  func.func @transform_0(%arg0: i32) -> (i32, i32) {
    %c0_i32 = arith.constant 0 : i32
    %c0_i32_0 = arith.constant 0 : i32
    return %arg0, %c0_i32 : i32, i32
  }
  func.func @transform_1(%arg0: i32) -> (i32, i32) {
    %c0_i32 = arith.constant 0 : i32
    %c0_i32_0 = arith.constant 0 : i32
    return %arg0, %c0_i32 : i32, i32
  }
  func.func @transform_2(%arg0: i32) -> (i32, i32) {
    %c0_i32 = arith.constant 0 : i32
    %c0_i32_0 = arith.constant 0 : i32
    %c0_i32_1 = arith.constant 0 : i32
    return %c0_i32, %c0_i32_0 : i32, i32
  }
  func.func @transform_3(%arg0: i32) -> (i32, i32) {
    %c0_i32 = arith.constant 0 : i32
    %c0_i32_0 = arith.constant 0 : i32
    %c0_i32_1 = arith.constant 0 : i32
    return %c0_i32, %c0_i32_0 : i32, i32
  }
  func.func @transform_4(%arg0: i32) -> (i32, i32) {
    %c0_i32 = arith.constant 0 : i32
    %c0_i32_0 = arith.constant 0 : i32
    return %arg0, %c0_i32 : i32, i32
  }
}

module attributes {stable_mosaic.version = 11 : i64} {
  func.func @_conv_mm_kernel(%arg0: i32, %arg1: memref<32x288xbf16, #tpu.memory_space<vmem>>, %arg2: memref<288x32xbf16, #tpu.memory_space<vmem>>, %arg3: memref<1x32xf32, #tpu.memory_space<vmem>>, %arg4: memref<32x32xf32, #tpu.memory_space<vmem>>) attributes {dimension_semantics = [#tpu.dimension_semantics<parallel>], iteration_bounds = array<i64: 1>, scalar_prefetch = 0 : i64, scratch_operands = 0 : i64, tpu.core_type = #tpu.core_type<tc>, window_params = [{transform_indices = @transform_0, window_bounds = array<i64: 32, 288>}, {pipeline_mode = #tpu.pipeline_mode<synchronous>, transform_indices = @transform_1, window_bounds = array<i64: 288, 32>}, {pipeline_mode = #tpu.pipeline_mode<synchronous>, transform_indices = @transform_2, window_bounds = array<i64: 1, 32>}, {transform_indices = @transform_3, window_bounds = array<i64: 32, 32>}]} {
    %c0 = arith.constant 0 : index
    %c0_0 = arith.constant 0 : index
    %0 = vector.load %arg1[%c0, %c0_0] : memref<32x288xbf16, #tpu.memory_space<vmem>>, vector<32x288xbf16>
    %c0_1 = arith.constant 0 : index
    %c0_2 = arith.constant 0 : index
    %1 = vector.load %arg2[%c0_1, %c0_2] : memref<288x32xbf16, #tpu.memory_space<vmem>>, vector<288x32xbf16>
    %cst = arith.constant dense<0.000000e+00> : vector<32x32xf32>
    %2 = tpu.matmul %0, %1, %cst {dimension_numbers = #tpu.dot_dimension_numbers<[1], [0], [0], [1], [0, 0, 1, 1], [], []>} : vector<32x288xbf16>, vector<288x32xbf16>, vector<32x32xf32> -> vector<32x32xf32>
    %c0_3 = arith.constant 0 : index
    %c0_4 = arith.constant 0 : index
    %3 = vector.load %arg3[%c0_3, %c0_4] : memref<1x32xf32, #tpu.memory_space<vmem>>, vector<1x32xf32>
    %4 = vector.broadcast %3 : vector<1x32xf32> to vector<32x32xf32>
    %5 = arith.addf %2, %4 : vector<32x32xf32>
    %c0_5 = arith.constant 0 : index
    %c0_6 = arith.constant 0 : index
    %6 = vector.load %arg4[%c0_5, %c0_6] : memref<32x32xf32, #tpu.memory_space<vmem>>, vector<32x32xf32>
    tpu.vector_store %arg4[%c0_5, %c0_6], %5 {strides = array<i32>} : memref<32x32xf32, #tpu.memory_space<vmem>>, vector<32x32xf32>,
    return
  }
  func.func @transform_0(%arg0: i32) -> (i32, i32) {
    %c0_i32 = arith.constant 0 : i32
    %c0_i32_0 = arith.constant 0 : i32
    return %arg0, %c0_i32 : i32, i32
  }
  func.func @transform_1(%arg0: i32) -> (i32, i32) {
    %c0_i32 = arith.constant 0 : i32
    %c0_i32_0 = arith.constant 0 : i32
    %c0_i32_1 = arith.constant 0 : i32
    return %c0_i32, %c0_i32_0 : i32, i32
  }
  func.func @transform_2(%arg0: i32) -> (i32, i32) {
    %c0_i32 = arith.constant 0 : i32
    %c0_i32_0 = arith.constant 0 : i32
    %c0_i32_1 = arith.constant 0 : i32
    return %c0_i32, %c0_i32_0 : i32, i32
  }
  func.func @transform_3(%arg0: i32) -> (i32, i32) {
    %c0_i32 = arith.constant 0 : i32
    %c0_i32_0 = arith.constant 0 : i32
    return %arg0, %c0_i32 : i32, i32
  }
}

module attributes {stable_mosaic.version = 11 : i64} {
  func.func @_residual_kernel(%arg0: i32, %arg1: memref<32x288xbf16, #tpu.memory_space<vmem>>, %arg2: memref<32x32xf32, #tpu.memory_space<vmem>>, %arg3: memref<288x8xbf16, #tpu.memory_space<vmem>>, %arg4: memref<8x32xbf16, #tpu.memory_space<vmem>>, %arg5: memref<32x32xf32, #tpu.memory_space<vmem>>) attributes {dimension_semantics = [#tpu.dimension_semantics<parallel>], iteration_bounds = array<i64: 1>, scalar_prefetch = 0 : i64, scratch_operands = 0 : i64, tpu.core_type = #tpu.core_type<tc>, window_params = [{transform_indices = @transform_0, window_bounds = array<i64: 32, 288>}, {transform_indices = @transform_1, window_bounds = array<i64: 32, 32>}, {pipeline_mode = #tpu.pipeline_mode<synchronous>, transform_indices = @transform_2, window_bounds = array<i64: 288, 8>}, {pipeline_mode = #tpu.pipeline_mode<synchronous>, transform_indices = @transform_3, window_bounds = array<i64: 8, 32>}, {transform_indices = @transform_4, window_bounds = array<i64: 32, 32>}]} {
    %c0 = arith.constant 0 : index
    %c0_0 = arith.constant 0 : index
    %0 = vector.load %arg1[%c0, %c0_0] : memref<32x288xbf16, #tpu.memory_space<vmem>>, vector<32x288xbf16>
    %cst = arith.constant 0.000000e+00 : bf16
    %1 = vector.broadcast %cst : bf16 to vector<32x288xbf16>
    %2 = arith.maximumf %0, %1 : vector<32x288xbf16>
    %c0_1 = arith.constant 0 : index
    %c0_2 = arith.constant 0 : index
    %3 = vector.load %arg3[%c0_1, %c0_2] : memref<288x8xbf16, #tpu.memory_space<vmem>>, vector<288x8xbf16>
    %cst_3 = arith.constant dense<0.000000e+00> : vector<32x8xf32>
    %4 = tpu.matmul %2, %3, %cst_3 {dimension_numbers = #tpu.dot_dimension_numbers<[1], [0], [0], [1], [0, 0, 1, 1], [], []>} : vector<32x288xbf16>, vector<288x8xbf16>, vector<32x8xf32> -> vector<32x8xf32>
    %cst_4 = arith.constant 0.000000e+00 : f32
    %5 = vector.broadcast %cst_4 : f32 to vector<32x8xf32>
    %6 = arith.maximumf %4, %5 : vector<32x8xf32>
    %7 = arith.truncf %6 : vector<32x8xf32> to vector<32x8xbf16>
    %c0_5 = arith.constant 0 : index
    %c0_6 = arith.constant 0 : index
    %8 = vector.load %arg2[%c0_5, %c0_6] : memref<32x32xf32, #tpu.memory_space<vmem>>, vector<32x32xf32>
    %c0_7 = arith.constant 0 : index
    %c0_8 = arith.constant 0 : index
    %9 = vector.load %arg4[%c0_7, %c0_8] : memref<8x32xbf16, #tpu.memory_space<vmem>>, vector<8x32xbf16>
    %cst_9 = arith.constant dense<0.000000e+00> : vector<32x32xf32>
    %10 = tpu.matmul %7, %9, %cst_9 {dimension_numbers = #tpu.dot_dimension_numbers<[1], [0], [0], [1], [0, 0, 1, 1], [], []>} : vector<32x8xbf16>, vector<8x32xbf16>, vector<32x32xf32> -> vector<32x32xf32>
    %11 = arith.addf %8, %10 : vector<32x32xf32>
    %cst_10 = arith.constant 0.000000e+00 : f32
    %12 = vector.broadcast %cst_10 : f32 to vector<32x32xf32>
    %13 = arith.maximumf %11, %12 : vector<32x32xf32>
    %c0_11 = arith.constant 0 : index
    %c0_12 = arith.constant 0 : index
    %14 = vector.load %arg5[%c0_11, %c0_12] : memref<32x32xf32, #tpu.memory_space<vmem>>, vector<32x32xf32>
    tpu.vector_store %arg5[%c0_11, %c0_12], %13 {strides = array<i32>} : memref<32x32xf32, #tpu.memory_space<vmem>>, vector<32x32xf32>,
    return
  }
  func.func @transform_0(%arg0: i32) -> (i32, i32) {
    %c0_i32 = arith.constant 0 : i32
    %c0_i32_0 = arith.constant 0 : i32
    return %arg0, %c0_i32 : i32, i32
  }
  func.func @transform_1(%arg0: i32) -> (i32, i32) {
    %c0_i32 = arith.constant 0 : i32
    %c0_i32_0 = arith.constant 0 : i32
    return %arg0, %c0_i32 : i32, i32
  }
  func.func @transform_2(%arg0: i32) -> (i32, i32) {
    %c0_i32 = arith.constant 0 : i32
    %c0_i32_0 = arith.constant 0 : i32
    %c0_i32_1 = arith.constant 0 : i32
    return %c0_i32, %c0_i32_0 : i32, i32
  }
  func.func @transform_3(%arg0: i32) -> (i32, i32) {
    %c0_i32 = arith.constant 0 : i32
    %c0_i32_0 = arith.constant 0 : i32
    %c0_i32_1 = arith.constant 0 : i32
    return %c0_i32, %c0_i32_0 : i32, i32
  }
  func.func @transform_4(%arg0: i32) -> (i32, i32) {
    %c0_i32 = arith.constant 0 : i32
    %c0_i32_0 = arith.constant 0 : i32
    return %arg0, %c0_i32 : i32, i32
  }
}

</mosaic_0001>

<bundles_post_ra>
// kernel: encoder_forward.5
= control target key start
LH: loop header
LB: loop body
LE: loop exit
PB: predicated region body
PF: predicated region fallthrough
CT: control target
= control target key end

     0   :  { %vm107_vm0 = vcmask 523264   ;;  %vm197_vm1 = vcmask 130048   ;;  %s430_s1 = inlined_call_operand.vmem [shape: bf16[64,16], index: 1, kind: input, shape index: {}]   ;;  %s431_s2 = inlined_call_operand.vmem [shape: f32[1,16], index: 2, kind: input, shape index: {}]   ;;  %s432_s0 = inlined_call_operand.vmem [shape: bf16[128,64], index: 0, kind: input, shape index: {}]   ;;  %s433_s3 = inlined_call_operand.vmem [shape: f32[128,16], index: 3, kind: output, shape index: {}]  }
   0x1   :  { %v285_v0 = vld [vmem:[%s430_s1 + $0x18] sm:$0xff]  ;;  %v284_v1 = vld [vmem:[%s430_s1 + $0x10] sm:$0xff]  ;;  %v283_v2 = vld [vmem:[%s430_s1 + $0x8] sm:$0xff] }
   0x2   :  { %136 = vmatpush.bf16.msra.mxu0 %v285_v0  ;;  %286 = vmatpush.bf16.msra.mxu1 %v285_v0  ;;  %v282_v3 = vld [vmem:[%s430_s1] sm:$0xff]  ;;  %v276_v5 = vld [vmem:[%s432_s0 + $0x10] sm:$0xff]  ;;  %v275_v8 = vld [vmem:[%s432_s0 + $0x8] sm:$0xff] }
   0x3   :  { %287 = vmatpush.bf16.msra.mxu2 %v285_v0  ;;  %288 = vmatpush.bf16.msra.mxu3 %v285_v0  ;;  %v274_v4 = vld [vmem:[%s432_s0] sm:$0xff]  ;;  %v280_v7 = vld [vmem:[%s432_s0 + $0x30] sm:$0xff]  ;;  %v277_v9 = vld [vmem:[%s432_s0 + $0x18] sm:$0xff] }
   0x4   :  { %v278_v6 = vld [vmem:[%s432_s0 + $0x20] sm:$0xff]  ;;  %v279_v10 = vld [vmem:[%s432_s0 + $0x28] sm:$0xff]  ;;  %v281_v11 = vld [vmem:[%s432_s0 + $0x38] sm:$0xff] }
   0x5   :  { %v298_v12 = vld [vmem:[%s431_s2] ss:$0 sm:$0xff] }
   0x6   :  { %137 = vmatpush.bf16.msra.mxu0 %v284_v1  ;;  %289 = vmatpush.bf16.msra.mxu1 %v284_v1 }
   0x7   :  { %290 = vmatpush.bf16.msra.mxu2 %v284_v1  ;;  %291 = vmatpush.bf16.msra.mxu3 %v284_v1 }
   0xa   :  { %138 = vmatpush.bf16.msra.mxu0 %v283_v2  ;;  %292 = vmatpush.bf16.msra.mxu1 %v283_v2 }
   0xb   :  { %293 = vmatpush.bf16.msra.mxu2 %v283_v2  ;;  %294 = vmatpush.bf16.msra.mxu3 %v283_v2 }
   0xe   :  { %139 = vmatpush.bf16.msra.mxu0 %v282_v3  ;;  %295 = vmatpush.bf16.msra.mxu1 %v282_v3 }
   0xf   :  { %296 = vmatpush.bf16.msra.mxu2 %v282_v3  ;;  %297 = vmatpush.bf16.msra.mxu3 %v282_v3 }
  0x11   :  { %266 = vmatmul.msk.bf16.vlgmr.msra.gmra.mxu0 %vm107_vm0, %v274_v4  ;;  %268 = vmatmul.msk.bf16.vlgmr.msra.gmra.mxu1 %vm107_vm0, %v276_v5 }
  0x12   :  { %270 = vmatmul.msk.bf16.vlgmr.msra.gmra.mxu2 %vm107_vm0, %v278_v6  ;;  %272 = vmatmul.msk.bf16.vlgmr.msra.gmra.mxu3 %vm107_vm0, %v280_v7 }
  0x21   :  { %267 = vmatmul.msk.bf16.gmra.mxu0 %vm107_vm0, %v275_v8  ;;  %269 = vmatmul.msk.bf16.gmra.mxu1 %vm107_vm0, %v277_v9 }
  0x22   :  { %271 = vmatmul.msk.bf16.gmra.mxu2 %vm107_vm0, %v279_v10  ;;  %273 = vmatmul.msk.bf16.gmra.mxu3 %vm107_vm0, %v281_v11 }
  0x8e   :  { %v141_v13 = vpop.f32.mrf.mxu0  ;;  %v151_v14 = vpop.f32.mrf.mxu1 }
  0x8f   :  { %v142_v15 = vadd.f32 %v298_v12, %v141_v13  ;;  %v152_v16 = vadd.f32 %v298_v12, %v151_v14 }
  0x91   :  { %v181_v17 = vmax.f32 %v142_v15, 0.0  ;;  %v185_v18 = vmax.f32 %v152_v16, 0.0 }
  0x93   :  { %198 = vst.msk [vmem:[%s433_s3] sm:$0xff] %vm197_vm1, %v181_v17 }
  0x94   :  { %202 = vst.msk [vmem:[%s433_s3 + $0x20] sm:$0xff] %vm197_vm1, %v185_v18 }
  0x95   :  { %v161_v19 = vpop.f32.mrf.mxu2  ;;  %v171_v20 = vpop.f32.mrf.mxu3 }
  0x96   :  { %v162_v21 = vadd.f32 %v298_v12, %v161_v19  ;;  %v172_v22 = vadd.f32 %v298_v12, %v171_v20  ;;  %v143_v23 = vpop.f32.mrf.mxu0  ;;  %v153_v24 = vpop.f32.mrf.mxu1 }
  0x97   :  { %v144_v25 = vadd.f32 %v298_v12, %v143_v23  ;;  %v154_v26 = vadd.f32 %v298_v12, %v153_v24 }
  0x98   :  { %v189_v27 = vmax.f32 %v162_v21, 0.0  ;;  %v193_v28 = vmax.f32 %v172_v22, 0.0 }
  0x99   :  { %v182_v29 = vmax.f32 %v144_v25, 0.0  ;;  %v186_v30 = vmax.f32 %v154_v26, 0.0 }
  0x9a   :  { %206 = vst.msk [vmem:[%s433_s3 + $0x40] sm:$0xff] %vm197_vm1, %v189_v27 }
  0x9b   :  { %210 = vst.msk [vmem:[%s433_s3 + $0x60] sm:$0xff] %vm197_vm1, %v193_v28 }
  0x9c   :  { %199 = vst.msk [vmem:[%s433_s3 + $0x8] sm:$0xff] %vm197_vm1, %v182_v29 }
  0x9d   :  { %203 = vst.msk [vmem:[%s433_s3 + $0x28] sm:$0xff] %vm197_vm1, %v186_v30  ;;  %v163_v31 = vpop.f32.mrf.mxu2  ;;  %v173_v32 = vpop.f32.mrf.mxu3 }
  0x9e   :  { %v164_v33 = vadd.f32 %v298_v12, %v163_v31  ;;  %v174_v34 = vadd.f32 %v298_v12, %v173_v32  ;;  %v146_v35 = vpop.f32.mrf.mxu0  ;;  %v156_v36 = vpop.f32.mrf.mxu1 }
  0x9f   :  { %v147_v37 = vadd.f32 %v298_v12, %v146_v35  ;;  %v157_v38 = vadd.f32 %v298_v12, %v156_v36 }
  0xa0   :  { %v190_v39 = vmax.f32 %v164_v33, 0.0  ;;  %v194_v40 = vmax.f32 %v174_v34, 0.0 }
  0xa1   :  { %v183_v41 = vmax.f32 %v147_v37, 0.0  ;;  %v187_v42 = vmax.f32 %v157_v38, 0.0 }
  0xa2   :  { %207 = vst.msk [vmem:[%s433_s3 + $0x48] sm:$0xff] %vm197_vm1, %v190_v39 }
  0xa3   :  { %211 = vst.msk [vmem:[%s433_s3 + $0x68] sm:$0xff] %vm197_vm1, %v194_v40 }
  0xa4   :  { %200 = vst.msk [vmem:[%s433_s3 + $0x10] sm:$0xff] %vm197_vm1, %v183_v41 }
  0xa5   :  { %204 = vst.msk [vmem:[%s433_s3 + $0x30] sm:$0xff] %vm197_vm1, %v187_v42  ;;  %v166_v43 = vpop.f32.mrf.mxu2  ;;  %v176_v44 = vpop.f32.mrf.mxu3 }
  0xa6   :  { %v167_v45 = vadd.f32 %v298_v12, %v166_v43  ;;  %v177_v46 = vadd.f32 %v298_v12, %v176_v44  ;;  %v148_v47 = vpop.f32.mrf.mxu0  ;;  %v158_v48 = vpop.f32.mrf.mxu1 }
  0xa7   :  { %v149_v49 = vadd.f32 %v298_v12, %v148_v47  ;;  %v159_v50 = vadd.f32 %v298_v12, %v158_v48 }
  0xa8   :  { %v191_v51 = vmax.f32 %v167_v45, 0.0  ;;  %v195_v52 = vmax.f32 %v177_v46, 0.0 }
  0xa9   :  { %v184_v53 = vmax.f32 %v149_v49, 0.0  ;;  %v188_v54 = vmax.f32 %v159_v50, 0.0 }
  0xaa   :  { %208 = vst.msk [vmem:[%s433_s3 + $0x50] sm:$0xff] %vm197_vm1, %v191_v51 }
  0xab   :  { %212 = vst.msk [vmem:[%s433_s3 + $0x70] sm:$0xff] %vm197_vm1, %v195_v52 }
  0xac   :  { %201 = vst.msk [vmem:[%s433_s3 + $0x18] sm:$0xff] %vm197_vm1, %v184_v53 }
  0xad   :  { %205 = vst.msk [vmem:[%s433_s3 + $0x38] sm:$0xff] %vm197_vm1, %v188_v54  ;;  %v168_v55 = vpop.f32.mrf.mxu2  ;;  %v178_v56 = vpop.f32.mrf.mxu3 }
  0xae   :  { %v169_v57 = vadd.f32 %v298_v12, %v168_v55  ;;  %v179_v58 = vadd.f32 %v298_v12, %v178_v56 }
  0xb0   :  { %v192_v59 = vmax.f32 %v169_v57, 0.0  ;;  %v196_v60 = vmax.f32 %v179_v58, 0.0 }
  0xb2   :  { %209 = vst.msk [vmem:[%s433_s3 + $0x58] sm:$0xff] %vm197_vm1, %v192_v59 }
  0xb3   :  { %213 = vst.msk [vmem:[%s433_s3 + $0x78] sm:$0xff] %vm197_vm1, %v196_v60 }

// kernel: encoder_forward.6
= control target key start
LH: loop header
LB: loop body
LE: loop exit
PB: predicated region body
PF: predicated region fallthrough
CT: control target
= control target key end

     0   :  { %vm212_vm0 = vcmask 261120   ;;  %s449_s1 = inlined_call_operand.vmem [shape: bf16[256,32], index: 1, kind: input, shape index: {}]   ;;  %s450_s2 = inlined_call_operand.vmem [shape: f32[1,32], index: 2, kind: input, shape index: {}]   ;;  %s451_s0 = inlined_call_operand.vmem [shape: bf16[32,256], index: 0, kind: input, shape index: {}]   ;;  %s452_s3 = inlined_call_operand.vmem [shape: f32[32,32], index: 3, kind: output, shape index: {}]  }
   0x1   :  { %v312_v0 = vld [vmem:[%s449_s1 + $0x38] sm:$0xff]  ;;  %v311_v2 = vld [vmem:[%s449_s1 + $0x30] sm:$0xff]  ;;  %v310_v4 = vld [vmem:[%s449_s1 + $0x28] sm:$0xff] }
   0x2   :  { %v320_v1 = vld [vmem:[%s449_s1 + $0x78] sm:$0xff]  ;;  %170 = vmatpush.bf16.msra.mxu0 %v312_v0  ;;  %321 = vmatpush.bf16.msra.mxu2 %v312_v0  ;;  %v319_v3 = vld [vmem:[%s449_s1 + $0x70] sm:$0xff]  ;;  %v318_v5 = vld [vmem:[%s449_s1 + $0x68] sm:$0xff] }
   0x3   :  { %189 = vmatpush.bf16.msra.mxu1 %v320_v1  ;;  %329 = vmatpush.bf16.msra.mxu3 %v320_v1  ;;  %v309_v6 = vld [vmem:[%s449_s1 + $0x20] sm:$0xff]  ;;  %v308_v8 = vld [vmem:[%s449_s1 + $0x18] sm:$0xff]  ;;  %v307_v10 = vld [vmem:[%s449_s1 + $0x10] sm:$0xff] }
   0x4   :  { %v317_v7 = vld [vmem:[%s449_s1 + $0x60] sm:$0xff]  ;;  %v316_v9 = vld [vmem:[%s449_s1 + $0x58] sm:$0xff]  ;;  %v315_v11 = vld [vmem:[%s449_s1 + $0x50] sm:$0xff] }
   0x5   :  { %v306_v12 = vld [vmem:[%s449_s1 + $0x8] sm:$0xff]  ;;  %v305_v14 = vld [vmem:[%s449_s1] sm:$0xff]  ;;  %v231_v18 = vld [vmem:[%s451_s0 + $0x10] sm:$0xf] }
   0x6   :  { %171 = vmatpush.bf16.msra.mxu0 %v311_v2  ;;  %322 = vmatpush.bf16.msra.mxu2 %v311_v2  ;;  %v314_v13 = vld [vmem:[%s449_s1 + $0x48] sm:$0xff]  ;;  %v313_v15 = vld [vmem:[%s449_s1 + $0x40] sm:$0xff]  ;;  %v304_v19 = vld [vmem:[%s451_s0 + $0x14] sm:$0xf0] }
   0x7   :  { %190 = vmatpush.bf16.msra.mxu1 %v319_v3  ;;  %330 = vmatpush.bf16.msra.mxu3 %v319_v3  ;;  %v223_v16 = vld [vmem:[%s451_s0] sm:$0xf]  ;;  %v302_v17 = vld [vmem:[%s451_s0 + $0x4] sm:$0xf0]  ;;  %v301_v20 = vld [vmem:[%s451_s0 + $0x4] sm:$0xf]  ;;  %v232_v25 = vor.u32 %v304_v19, %v231_v18 }
   0x8   :  { %v225_v21 = vld [vmem:[%s451_s0 + $0x8] sm:$0xf0]  ;;  %v303_v22 = vld [vmem:[%s451_s0 + $0x14] sm:$0xf]  ;;  %v233_v23 = vld [vmem:[%s451_s0 + $0x18] sm:$0xf0]  ;;  %v224_v24 = vor.u32 %v302_v17, %v223_v16 }
   0x9   :  { %v228_v26 = vor.u32 %v301_v20, %v225_v21  ;;  %v236_v27 = vor.u32 %v303_v22, %v233_v23  ;;  %v337_v28 = vld [vmem:[%s450_s2] ss:$0 sm:$0xff] }
   0xa   :  { %172 = vmatpush.bf16.msra.mxu0 %v310_v4  ;;  %323 = vmatpush.bf16.msra.mxu2 %v310_v4 }
   0xb   :  { %191 = vmatpush.bf16.msra.mxu1 %v318_v5  ;;  %331 = vmatpush.bf16.msra.mxu3 %v318_v5 }
   0xe   :  { %173 = vmatpush.bf16.msra.mxu0 %v309_v6  ;;  %324 = vmatpush.bf16.msra.mxu2 %v309_v6 }
   0xf   :  { %192 = vmatpush.bf16.msra.mxu1 %v317_v7  ;;  %332 = vmatpush.bf16.msra.mxu3 %v317_v7 }
  0x12   :  { %174 = vmatpush.bf16.msra.mxu0 %v308_v8  ;;  %325 = vmatpush.bf16.msra.mxu2 %v308_v8 }
  0x13   :  { %193 = vmatpush.bf16.msra.mxu1 %v316_v9  ;;  %333 = vmatpush.bf16.msra.mxu3 %v316_v9 }
  0x16   :  { %175 = vmatpush.bf16.msra.mxu0 %v307_v10  ;;  %326 = vmatpush.bf16.msra.mxu2 %v307_v10 }
  0x17   :  { %194 = vmatpush.bf16.msra.mxu1 %v315_v11  ;;  %334 = vmatpush.bf16.msra.mxu3 %v315_v11 }
  0x1a   :  { %176 = vmatpush.bf16.msra.mxu0 %v306_v12  ;;  %327 = vmatpush.bf16.msra.mxu2 %v306_v12 }
  0x1b   :  { %195 = vmatpush.bf16.msra.mxu1 %v314_v13  ;;  %335 = vmatpush.bf16.msra.mxu3 %v314_v13 }
  0x1e   :  { %177 = vmatpush.bf16.msra.mxu0 %v305_v14  ;;  %328 = vmatpush.bf16.msra.mxu2 %v305_v14 }
  0x1f   :  { %196 = vmatpush.bf16.msra.mxu1 %v313_v15  ;;  %336 = vmatpush.bf16.msra.mxu3 %v313_v15 }
  0x21   :  { %178 = vmatmul.bf16.vlgmr.msra.gmra.mxu0 %v224_v24  ;;  %183 = vmatmul.bf16.vlgmr.msra.gmra.mxu2 %v232_v25 }
  0x22   :  { %197 = vmatmul.bf16.vlgmr.msra.gmra.mxu1 %v228_v26  ;;  %202 = vmatmul.bf16.vlgmr.msra.gmra.mxu3 %v236_v27 }
  0x9e   :  { %v179_v29 = vpop.f32.mrf.mxu0 }
  0x9f   :  { %v180_v30 = vadd.f32 %v337_v28, %v179_v29  ;;  %v198_v31 = vpop.f32.mrf.mxu1 }
  0xa1   :  { %v199_v32 = vadd.f32 %v198_v31, %v180_v30 }
  0xa3   :  { %v208_v33 = vmax.f32 %v199_v32, 0.0 }
  0xa4   :  { %v184_v34 = vpop.f32.mrf.mxu2 }
  0xa5   :  { %213 = vst.msk [vmem:[%s452_s3] sm:$0xff] %vm212_vm0, %v208_v33  ;;  %v185_v35 = vadd.f32 %v337_v28, %v184_v34  ;;  %v203_v36 = vpop.f32.mrf.mxu3 }
  0xa6   :  { %v181_v37 = vpop.f32.mrf.mxu0 }
  0xa7   :  { %v204_v38 = vadd.f32 %v203_v36, %v185_v35  ;;  %v182_v39 = vadd.f32 %v337_v28, %v181_v37  ;;  %v200_v40 = vpop.f32.mrf.mxu1 }
  0xa9   :  { %v210_v41 = vmax.f32 %v204_v38, 0.0  ;;  %v201_v42 = vadd.f32 %v200_v40, %v182_v39 }
  0xab   :  { %215 = vst.msk [vmem:[%s452_s3 + $0x10] sm:$0xff] %vm212_vm0, %v210_v41  ;;  %v209_v43 = vmax.f32 %v201_v42, 0.0 }
  0xac   :  { %v186_v44 = vpop.f32.mrf.mxu2 }
  0xad   :  { %214 = vst.msk [vmem:[%s452_s3 + $0x8] sm:$0xff] %vm212_vm0, %v209_v43  ;;  %v187_v45 = vadd.f32 %v337_v28, %v186_v44  ;;  %v205_v46 = vpop.f32.mrf.mxu3 }
  0xaf   :  { %v206_v47 = vadd.f32 %v205_v46, %v187_v45 }
  0xb1   :  { %v211_v48 = vmax.f32 %v206_v47, 0.0 }
  0xb3   :  { %216 = vst.msk [vmem:[%s452_s3 + $0x18] sm:$0xff] %vm212_vm0, %v211_v48 }

// kernel: encoder_forward.8
= control target key start
LH: loop header
LB: loop body
LE: loop exit
PB: predicated region body
PF: predicated region fallthrough
CT: control target
= control target key end

     0   :  { %vm200_vm0 = vcmask 261120   ;;  %vm282_vm1 = vcmask 1043456   ;;  %vm275_vm2 = vcmask 64512   ;;  %s549_s2 = inlined_call_operand.vmem [shape: bf16[288,8], index: 2, kind: input, shape index: {}]   ;;  %s550_s0 = inlined_call_operand.vmem [shape: bf16[32,288], index: 0, kind: input, shape index: {}]   ;;  %s551_s3 = inlined_call_operand.vmem [shape: bf16[8,32], index: 3, kind: input, shape index: {}]   ;;  %s552_s1 = inlined_call_operand.vmem [shape: f32[32,32], index: 1, kind: input, shape index: {}, may-alias: {1,4}]   ;;  %s553_s4 = inlined_call_operand.vmem [shape: f32[32,32], index: 4, kind: output, shape index: {}, may-alias: {1,4}]  }
   0x1   :  { %v400_v0 = vld [vmem:[%s549_s2 + $0x38] sm:$0xff]  ;;  %v399_v2 = vld [vmem:[%s549_s2 + $0x30] sm:$0xff]  ;;  %v410_v4 = vld [vmem:[%s549_s2 + $0x88] sm:$0xff] }
   0x2   :  { %v408_v1 = vld [vmem:[%s549_s2 + $0x78] sm:$0xff]  ;;  %207 = vmatpush.bf16.msra.mxu0 %v400_v0  ;;  %v407_v3 = vld [vmem:[%s549_s2 + $0x70] sm:$0xff]  ;;  %251 = vmatpush.bf16.msra.mxu2 %v410_v4  ;;  %v409_v5 = vld [vmem:[%s549_s2 + $0x80] sm:$0xff] }
   0x3   :  { %226 = vmatpush.bf16.msra.mxu1 %v408_v1  ;;  %v19_v6 = vld [vmem:[%s550_s0 + $0x8] sm:$0xf]  ;;  %v21_v7 = vld [vmem:[%s550_s0 + $0x14] sm:$0xf]  ;;  %v397_v15 = vld [vmem:[%s549_s2 + $0x20] sm:$0xff] }
   0x4   :  { %v28_v8 = vunpack.c.l.bf16 %v19_v6  ;;  %v31_v9 = vunpack.c.l.bf16 %v21_v7  ;;  %v398_v10 = vld [vmem:[%s549_s2 + $0x28] sm:$0xff]  ;;  %v405_v16 = vld [vmem:[%s549_s2 + $0x60] sm:$0xff]  ;;  %v396_v19 = vld [vmem:[%s549_s2 + $0x18] sm:$0xff] }
   0x5   :  { %v406_v11 = vld [vmem:[%s549_s2 + $0x68] sm:$0xff]  ;;  %v23_v17 = vld [vmem:[%s550_s0 + $0x20] sm:$0xf]  ;;  %v404_v20 = vld [vmem:[%s549_s2 + $0x58] sm:$0xff] }
   0x6   :  { %208 = vmatpush.bf16.msra.mxu0 %v399_v2  ;;  %v40_v12 = vmax.f32 %v28_v8, 0.0  ;;  %v43_v13 = vmax.f32 %v31_v9, 0.0  ;;  %252 = vmatpush.bf16.msra.mxu2 %v409_v5  ;;  %v25_v18 = vld [vmem:[%s550_s0 + $0x2c] sm:$0xf]  ;;  %v34_v21 = vunpack.c.l.bf16 %v23_v17  ;;  %v395_v23 = vld [vmem:[%s549_s2 + $0x10] sm:$0xff]  ;;  %v18_v25 = vld [vmem:[%s550_s0] sm:$0xff] }
   0x7   :  { %227 = vmatpush.bf16.msra.mxu1 %v407_v3  ;;  %v37_v22 = vunpack.c.l.bf16 %v25_v18  ;;  %v403_v24 = vld [vmem:[%s549_s2 + $0x50] sm:$0xff]  ;;  %v26_v29 = vunpack.c.l.bf16 %v18_v25  ;;  %v27_v31 = vunpack.c.h.bf16 %v18_v25  ;;  %v394_v33 = vld [vmem:[%s549_s2 + $0x8] sm:$0xff]  ;;  %v393_v40 = vld [vmem:[%s549_s2] sm:$0xff] }
   0x8   :  { %v52_v14 = vpack.c.bf16 %v43_v13, %v40_v12  ;;  %v20_v26 = vld [vmem:[%s550_s0 + $0xc] sm:$0xff]  ;;  %v46_v27 = vmax.f32 %v34_v21, 0.0  ;;  %v401_v41 = vld [vmem:[%s549_s2 + $0x40] sm:$0xff]  ;;  %v22_v44 = vld [vmem:[%s550_s0 + $0x18] sm:$0xff] }
   0x9   :  { %v49_v28 = vmax.f32 %v37_v22, 0.0  ;;  %v29_v30 = vunpack.c.l.bf16 %v20_v26  ;;  %v30_v32 = vunpack.c.h.bf16 %v20_v26  ;;  %v402_v34 = vld [vmem:[%s549_s2 + $0x48] sm:$0xff]  ;;  %v38_v36 = vmax.f32 %v26_v29, 0.0  ;;  %v274_v56 = vld [vmem:[%s551_s3] sm:$0xf] }
   0xa   :  { %209 = vmatpush.bf16.msra.mxu0 %v398_v10  ;;  %389 = vmatmul.msk.bf16.vlgmr.msra.gmra.mxu2 %vm200_vm0, %v52_v14  ;;  %v39_v38 = vmax.f32 %v27_v31, 0.0  ;;  %v24_v45 = vld [vmem:[%s550_s0 + $0x24] sm:$0xff]  ;;  %v32_v46 = vunpack.c.l.bf16 %v22_v44  ;;  %v33_v48 = vunpack.c.h.bf16 %v22_v44  ;;  %v284_v57 = vsel %vm282_vm1, %v274_v56, 0 }
   0xb   :  { %228 = vmatpush.bf16.msra.mxu1 %v406_v11  ;;  %v55_v35 = vpack.c.bf16 %v49_v28, %v46_v27  ;;  %v41_v37 = vmax.f32 %v29_v30, 0.0  ;;  %v42_v39 = vmax.f32 %v30_v32, 0.0  ;;  %v35_v47 = vunpack.c.l.bf16 %v24_v45  ;;  %293 = vmatpush.bf16.msra.mxu3 %v284_v57 }
   0xc   :  { %v36_v49 = vunpack.c.h.bf16 %v24_v45  ;;  %v44_v50 = vmax.f32 %v32_v46, 0.0  ;;  %v45_v52 = vmax.f32 %v33_v48, 0.0 }
   0xd   :  { %v50_v42 = vpack.c.bf16 %v41_v37, %v38_v36  ;;  %v51_v43 = vpack.c.bf16 %v42_v39, %v39_v38  ;;  %v47_v51 = vmax.f32 %v35_v47, 0.0 }
   0xe   :  { %210 = vmatpush.bf16.msra.mxu0 %v397_v15  ;;  %v48_v53 = vmax.f32 %v36_v49, 0.0 }
   0xf   :  { %229 = vmatpush.bf16.msra.mxu1 %v405_v16  ;;  %v53_v54 = vpack.c.bf16 %v47_v51, %v44_v50 }
  0x10   :  { %v54_v55 = vpack.c.bf16 %v48_v53, %v45_v52 }
  0x12   :  { %211 = vmatpush.bf16.msra.mxu0 %v396_v19 }
  0x13   :  { %230 = vmatpush.bf16.msra.mxu1 %v404_v20  ;;  %v270_v20 = vld [vmem:[%s552_s1] sm:$0xff] }
  0x16   :  { %212 = vmatpush.bf16.msra.mxu0 %v395_v23 }
  0x17   :  { %231 = vmatpush.bf16.msra.mxu1 %v403_v24 }
  0x1a   :  { %213 = vmatpush.bf16.msra.mxu0 %v394_v33  ;;  %390 = vmatmul.msk.bf16.gmra.mxu2 %vm200_vm0, %v55_v35 }
  0x1b   :  { %232 = vmatpush.bf16.msra.mxu1 %v402_v34 }
  0x1e   :  { %214 = vmatpush.bf16.msra.mxu0 %v393_v40 }
  0x1f   :  { %233 = vmatpush.bf16.msra.mxu1 %v401_v41 }
  0x21   :  { %215 = vmatmul.bf16.vlgmr.msra.gmra.mxu0 %v50_v42 }
  0x22   :  { %234 = vmatmul.bf16.vlgmr.msra.gmra.mxu1 %v51_v43 }
  0x31   :  { %220 = vmatmul.bf16.gmra.mxu0 %v53_v54 }
  0x32   :  { %239 = vmatmul.bf16.gmra.mxu1 %v54_v55 }
  0x8d   :  { %v254_v58 = vpop.f32.mrf.mxu2 }
  0x95   :  { %v256_v62 = vpop.f32.mrf.mxu2 }
  0x9d   :  { %v259_v6 = vpop.f32.mrf.mxu2 }
  0x9e   :  { %v216_v59 = vpop.f32.mrf.mxu0 }
  0x9f   :  { %v235_v60 = vpop.f32.mrf.mxu1 }
  0xa0   :  { %v236_v61 = vadd.f32 %v235_v60, %v216_v59 }
  0xa2   :  { %v255_v1 = vadd.f32 %v254_v58, %v236_v61 }
  0xa4   :  { %v264_v4 = vmax.f32 %v255_v1, 0.0 }
  0xa5   :  { %v261_v15 = vpop.f32.mrf.mxu2 }
  0xa6   :  { %v218_v63 = vpop.f32.mrf.mxu0 }
  0xa7   :  { %v237_v0 = vpop.f32.mrf.mxu1 }
  0xa8   :  { %v238_v2 = vadd.f32 %v237_v0, %v218_v63 }
  0xaa   :  { %v257_v3 = vadd.f32 %v256_v62, %v238_v2 }
  0xac   :  { %v265_v5 = vmax.f32 %v257_v3, 0.0 }
  0xae   :  { %v268_v7 = vpack.c.bf16 %v265_v5, %v264_v4  ;;  %v221_v8 = vpop.f32.mrf.mxu0 }
  0xaf   :  { %v240_v9 = vpop.f32.mrf.mxu1 }
  0xb0   :  { %391 = vmatmul.msk.bf16.vlgmr.msra.gmra.mxu3 %vm275_vm2, %v268_v7  ;;  %v241_v10 = vadd.f32 %v240_v9, %v221_v8 }
  0xb2   :  { %v260_v13 = vadd.f32 %v259_v6, %v241_v10 }
  0xb4   :  { %v266_v17 = vmax.f32 %v260_v13, 0.0 }
  0xb6   :  { %v223_v11 = vpop.f32.mrf.mxu0 }
  0xb7   :  { %v242_v12 = vpop.f32.mrf.mxu1 }
  0xb8   :  { %v243_v14 = vadd.f32 %v242_v12, %v223_v11 }
  0xba   :  { %v262_v16 = vadd.f32 %v261_v15, %v243_v14 }
  0xbc   :  { %v267_v18 = vmax.f32 %v262_v16, 0.0 }
  0xbe   :  { %v269_v19 = vpack.c.bf16 %v267_v18, %v266_v17 }
  0xc0   :  { %392 = vmatmul.msk.bf16.gmra.mxu3 %vm275_vm2, %v269_v19 }
 0x133   :  { %v295_v21 = vpop.f32.mrf.mxu3 }
 0x134   :  { %v305_v22 = vadd.f32 %v295_v21, %v270_v20 }
 0x136   :  { %309 = vst.msk [vmem:[%s553_s4] sm:$0xff] %vm200_vm0, %v305_v22 }
 0x13b   :  { %v297_v24 = vpop.f32.mrf.mxu3 }
 0x13d   :  { %v271_v23 = vld [vmem:[%s552_s1 + $0x8] sm:$0xff] }
 0x13e   :  { %v306_v25 = vadd.f32 %v297_v24, %v271_v23 }
 0x140   :  { %310 = vst.msk [vmem:[%s553_s4 + $0x8] sm:$0xff] %vm200_vm0, %v306_v25 }
 0x143   :  { %v300_v27 = vpop.f32.mrf.mxu3 }
 0x147   :  { %v272_v26 = vld [vmem:[%s552_s1 + $0x10] sm:$0xff] }
 0x148   :  { %v307_v28 = vadd.f32 %v300_v27, %v272_v26 }
 0x14a   :  { %311 = vst.msk [vmem:[%s553_s4 + $0x10] sm:$0xff] %vm200_vm0, %v307_v28 }
 0x14b   :  { %v302_v30 = vpop.f32.mrf.mxu3 }
 0x151   :  { %v273_v29 = vld [vmem:[%s552_s1 + $0x18] sm:$0xff] }
 0x152   :  { %v308_v31 = vadd.f32 %v302_v30, %v273_v29 }
 0x154   :  { %312 = vst.msk [vmem:[%s553_s4 + $0x18] sm:$0xff] %vm200_vm0, %v308_v31 }

// kernel: encoder_forward.7
= control target key start
LH: loop header
LB: loop body
LE: loop exit
PB: predicated region body
PF: predicated region fallthrough
CT: control target
= control target key end

     0   :  { %vm201_vm0 = vcmask 261120   ;;  %s535_s1 = inlined_call_operand.vmem [shape: bf16[288,32], index: 1, kind: input, shape index: {}]   ;;  %s536_s0 = inlined_call_operand.vmem [shape: bf16[32,288], index: 0, kind: input, shape index: {}]   ;;  %s537_s2 = inlined_call_operand.vmem [shape: f32[1,32], index: 2, kind: input, shape index: {}]   ;;  %s538_s3 = inlined_call_operand.vmem [shape: f32[32,32], index: 3, kind: output, shape index: {}]  }
   0x1   :  { %v384_v0 = vld [vmem:[%s535_s1 + $0x38] sm:$0xff]  ;;  %v383_v2 = vld [vmem:[%s535_s1 + $0x30] sm:$0xff]  ;;  %v394_v3 = vld [vmem:[%s535_s1 + $0x88] sm:$0xff] }
   0x2   :  { %v392_v1 = vld [vmem:[%s535_s1 + $0x78] sm:$0xff]  ;;  %208 = vmatpush.bf16.msra.mxu0 %v384_v0  ;;  %395 = vmatpush.bf16.msra.mxu3 %v384_v0  ;;  %v391_v4 = vld [vmem:[%s535_s1 + $0x70] sm:$0xff]  ;;  %v393_v5 = vld [vmem:[%s535_s1 + $0x80] sm:$0xff] }
   0x3   :  { %227 = vmatpush.bf16.msra.mxu1 %v392_v1  ;;  %252 = vmatpush.bf16.msra.mxu2 %v394_v3  ;;  %v283_v6 = vld [vmem:[%s536_s0 + $0x8] sm:$0xf]  ;;  %v373_v7 = vld [vmem:[%s536_s0 + $0x10] sm:$0xf0]  ;;  %v381_v11 = vld [vmem:[%s535_s1 + $0x20] sm:$0xff] }
   0x4   :  { %v382_v8 = vld [vmem:[%s535_s1 + $0x28] sm:$0xff]  ;;  %v284_v10 = vor.u32 %v373_v7, %v283_v6  ;;  %v389_v12 = vld [vmem:[%s535_s1 + $0x60] sm:$0xff]  ;;  %v380_v13 = vld [vmem:[%s535_s1 + $0x18] sm:$0xff] }
   0x5   :  { %v390_v9 = vld [vmem:[%s535_s1 + $0x68] sm:$0xff]  ;;  %v388_v14 = vld [vmem:[%s535_s1 + $0x58] sm:$0xff]  ;;  %v379_v15 = vld [vmem:[%s535_s1 + $0x10] sm:$0xff] }
   0x6   :  { %209 = vmatpush.bf16.msra.mxu0 %v383_v2  ;;  %396 = vmatpush.bf16.msra.mxu3 %v383_v2  ;;  %v387_v16 = vld [vmem:[%s535_s1 + $0x50] sm:$0xff]  ;;  %v295_v17 = vld [vmem:[%s536_s0 + $0x20] sm:$0xf]  ;;  %v376_v18 = vld [vmem:[%s536_s0 + $0x28] sm:$0xf0] }
   0x7   :  { %228 = vmatpush.bf16.msra.mxu1 %v391_v4  ;;  %253 = vmatpush.bf16.msra.mxu2 %v393_v5  ;;  %v378_v19 = vld [vmem:[%s535_s1 + $0x8] sm:$0xff]  ;;  %v296_v21 = vor.u32 %v376_v18, %v295_v17  ;;  %v377_v22 = vld [vmem:[%s535_s1] sm:$0xff]  ;;  %v287_v25 = vld [vmem:[%s536_s0 + $0x18] sm:$0xf] }
   0x8   :  { %v386_v20 = vld [vmem:[%s535_s1 + $0x48] sm:$0xff]  ;;  %v275_v23 = vld [vmem:[%s536_s0] sm:$0xf]  ;;  %v375_v26 = vld [vmem:[%s536_s0 + $0x20] sm:$0xf0] }
   0x9   :  { %v372_v24 = vld [vmem:[%s536_s0 + $0x8] sm:$0xf0]  ;;  %v385_v27 = vld [vmem:[%s535_s1 + $0x40] sm:$0xff]  ;;  %v277_v29 = vld [vmem:[%s536_s0 + $0xc] sm:$0xf0]  ;;  %v288_v31 = vor.u32 %v375_v26, %v287_v25 }
   0xa   :  { %210 = vmatpush.bf16.msra.mxu0 %v382_v8  ;;  %397 = vmatpush.bf16.msra.mxu3 %v382_v8  ;;  %v371_v28 = vld [vmem:[%s536_s0 + $0x4] sm:$0xf]  ;;  %v276_v30 = vor.u32 %v372_v24, %v275_v23  ;;  %v374_v33 = vld [vmem:[%s536_s0 + $0x1c] sm:$0xf]  ;;  %v289_v34 = vld [vmem:[%s536_s0 + $0x24] sm:$0xf0] }
   0xb   :  { %229 = vmatpush.bf16.msra.mxu1 %v390_v9  ;;  %369 = vmatmul.msk.bf16.vlgmr.msra.gmra.mxu2 %vm201_vm0, %v284_v10  ;;  %v280_v32 = vor.u32 %v371_v28, %v277_v29  ;;  %v292_v35 = vor.u32 %v374_v33, %v289_v34  ;;  %v403_v37 = vld [vmem:[%s537_s2] ss:$0 sm:$0xff] }
   0xe   :  { %211 = vmatpush.bf16.msra.mxu0 %v381_v11  ;;  %398 = vmatpush.bf16.msra.mxu3 %v381_v11 }
   0xf   :  { %230 = vmatpush.bf16.msra.mxu1 %v389_v12 }
  0x12   :  { %212 = vmatpush.bf16.msra.mxu0 %v380_v13  ;;  %399 = vmatpush.bf16.msra.mxu3 %v380_v13 }
  0x13   :  { %231 = vmatpush.bf16.msra.mxu1 %v388_v14 }
  0x16   :  { %213 = vmatpush.bf16.msra.mxu0 %v379_v15  ;;  %400 = vmatpush.bf16.msra.mxu3 %v379_v15 }
  0x17   :  { %232 = vmatpush.bf16.msra.mxu1 %v387_v16 }
  0x1a   :  { %214 = vmatpush.bf16.msra.mxu0 %v378_v19  ;;  %401 = vmatpush.bf16.msra.mxu3 %v378_v19 }
  0x1b   :  { %233 = vmatpush.bf16.msra.mxu1 %v386_v20  ;;  %370 = vmatmul.msk.bf16.gmra.mxu2 %vm201_vm0, %v296_v21 }
  0x1e   :  { %215 = vmatpush.bf16.msra.mxu0 %v377_v22  ;;  %402 = vmatpush.bf16.msra.mxu3 %v377_v22 }
  0x1f   :  { %234 = vmatpush.bf16.msra.mxu1 %v385_v27 }
  0x21   :  { %216 = vmatmul.bf16.vlgmr.msra.gmra.mxu0 %v276_v30  ;;  %221 = vmatmul.bf16.vlgmr.msra.gmra.mxu3 %v288_v31 }
  0x22   :  { %235 = vmatmul.bf16.vlgmr.msra.gmra.mxu1 %v280_v32 }
  0x32   :  { %240 = vmatmul.bf16.gmra.mxu1 %v292_v35 }
  0x8e   :  { %v255_v36 = vpop.f32.mrf.mxu2 }
  0x96   :  { %v257_v43 = vpop.f32.mrf.mxu2 }
  0x9e   :  { %v217_v38 = vpop.f32.mrf.mxu0  ;;  %v260_v51 = vpop.f32.mrf.mxu2 }
  0x9f   :  { %v218_v39 = vadd.f32 %v403_v37, %v217_v38  ;;  %v236_v40 = vpop.f32.mrf.mxu1 }
  0xa1   :  { %v237_v41 = vadd.f32 %v236_v40, %v218_v39 }
  0xa3   :  { %v256_v42 = vadd.f32 %v255_v36, %v237_v41 }
  0xa4   :  { %v222_v47 = vpop.f32.mrf.mxu3 }
  0xa5   :  { %265 = vst.msk [vmem:[%s538_s3] sm:$0xff] %vm201_vm0, %v256_v42  ;;  %v223_v50 = vadd.f32 %v403_v37, %v222_v47 }
  0xa6   :  { %v219_v44 = vpop.f32.mrf.mxu0  ;;  %v262_v59 = vpop.f32.mrf.mxu2 }
  0xa7   :  { %v220_v45 = vadd.f32 %v403_v37, %v219_v44  ;;  %v238_v46 = vpop.f32.mrf.mxu1 }
  0xa9   :  { %v239_v48 = vadd.f32 %v238_v46, %v220_v45 }
  0xab   :  { %v258_v49 = vadd.f32 %v257_v43, %v239_v48 }
  0xac   :  { %v224_v55 = vpop.f32.mrf.mxu3 }
  0xad   :  { %266 = vst.msk [vmem:[%s538_s3 + $0x8] sm:$0xff] %vm201_vm0, %v258_v49  ;;  %v225_v56 = vadd.f32 %v403_v37, %v224_v55 }
  0xaf   :  { %v241_v52 = vpop.f32.mrf.mxu1 }
  0xb0   :  { %v242_v53 = vadd.f32 %v241_v52, %v223_v50 }
  0xb2   :  { %v261_v54 = vadd.f32 %v260_v51, %v242_v53 }
  0xb4   :  { %267 = vst.msk [vmem:[%s538_s3 + $0x10] sm:$0xff] %vm201_vm0, %v261_v54 }
  0xb7   :  { %v243_v57 = vpop.f32.mrf.mxu1 }
  0xb8   :  { %v244_v58 = vadd.f32 %v243_v57, %v225_v56 }
  0xba   :  { %v263_v60 = vadd.f32 %v262_v59, %v244_v58 }
  0xbc   :  { %268 = vst.msk [vmem:[%s538_s3 + $0x18] sm:$0xff] %vm201_vm0, %v263_v60 }

// kernel: encoder_forward.9
= control target key start
LH: loop header
LB: loop body
LE: loop exit
PB: predicated region body
PF: predicated region fallthrough
CT: control target
= control target key end

     0   :  { %vm200_vm0 = vcmask 261120   ;;  %vm282_vm1 = vcmask 1043456   ;;  %vm275_vm2 = vcmask 64512   ;;  %s553_s2 = inlined_call_operand.vmem [shape: bf16[288,8], index: 2, kind: input, shape index: {}]   ;;  %s554_s0 = inlined_call_operand.vmem [shape: bf16[32,288], index: 0, kind: input, shape index: {}]   ;;  %s555_s3 = inlined_call_operand.vmem [shape: bf16[8,32], index: 3, kind: input, shape index: {}]   ;;  %s556_s1 = inlined_call_operand.vmem [shape: f32[32,32], index: 1, kind: input, shape index: {}, may-alias: {1,4}]   ;;  %s557_s4 = inlined_call_operand.vmem [shape: f32[32,32], index: 4, kind: output, shape index: {}, may-alias: {1,4}]  }
   0x1   :  { %v404_v0 = vld [vmem:[%s553_s2 + $0x38] sm:$0xff]  ;;  %v403_v2 = vld [vmem:[%s553_s2 + $0x30] sm:$0xff]  ;;  %v414_v4 = vld [vmem:[%s553_s2 + $0x88] sm:$0xff] }
   0x2   :  { %v412_v1 = vld [vmem:[%s553_s2 + $0x78] sm:$0xff]  ;;  %207 = vmatpush.bf16.msra.mxu0 %v404_v0  ;;  %v411_v3 = vld [vmem:[%s553_s2 + $0x70] sm:$0xff]  ;;  %251 = vmatpush.bf16.msra.mxu2 %v414_v4  ;;  %v413_v5 = vld [vmem:[%s553_s2 + $0x80] sm:$0xff] }
   0x3   :  { %226 = vmatpush.bf16.msra.mxu1 %v412_v1  ;;  %v19_v6 = vld [vmem:[%s554_s0 + $0x8] sm:$0xf]  ;;  %v21_v7 = vld [vmem:[%s554_s0 + $0x14] sm:$0xf]  ;;  %v401_v15 = vld [vmem:[%s553_s2 + $0x20] sm:$0xff] }
   0x4   :  { %v28_v8 = vunpack.c.l.bf16 %v19_v6  ;;  %v31_v9 = vunpack.c.l.bf16 %v21_v7  ;;  %v402_v10 = vld [vmem:[%s553_s2 + $0x28] sm:$0xff]  ;;  %v409_v16 = vld [vmem:[%s553_s2 + $0x60] sm:$0xff]  ;;  %v400_v19 = vld [vmem:[%s553_s2 + $0x18] sm:$0xff] }
   0x5   :  { %v410_v11 = vld [vmem:[%s553_s2 + $0x68] sm:$0xff]  ;;  %v23_v17 = vld [vmem:[%s554_s0 + $0x20] sm:$0xf]  ;;  %v408_v20 = vld [vmem:[%s553_s2 + $0x58] sm:$0xff] }
   0x6   :  { %208 = vmatpush.bf16.msra.mxu0 %v403_v2  ;;  %v40_v12 = vmax.f32 %v28_v8, 0.0  ;;  %v43_v13 = vmax.f32 %v31_v9, 0.0  ;;  %252 = vmatpush.bf16.msra.mxu2 %v413_v5  ;;  %v25_v18 = vld [vmem:[%s554_s0 + $0x2c] sm:$0xf]  ;;  %v34_v21 = vunpack.c.l.bf16 %v23_v17  ;;  %v399_v23 = vld [vmem:[%s553_s2 + $0x10] sm:$0xff]  ;;  %v18_v25 = vld [vmem:[%s554_s0] sm:$0xff] }
   0x7   :  { %227 = vmatpush.bf16.msra.mxu1 %v411_v3  ;;  %v37_v22 = vunpack.c.l.bf16 %v25_v18  ;;  %v407_v24 = vld [vmem:[%s553_s2 + $0x50] sm:$0xff]  ;;  %v26_v29 = vunpack.c.l.bf16 %v18_v25  ;;  %v27_v31 = vunpack.c.h.bf16 %v18_v25  ;;  %v398_v33 = vld [vmem:[%s553_s2 + $0x8] sm:$0xff]  ;;  %v397_v40 = vld [vmem:[%s553_s2] sm:$0xff] }
   0x8   :  { %v52_v14 = vpack.c.bf16 %v43_v13, %v40_v12  ;;  %v20_v26 = vld [vmem:[%s554_s0 + $0xc] sm:$0xff]  ;;  %v46_v27 = vmax.f32 %v34_v21, 0.0  ;;  %v405_v41 = vld [vmem:[%s553_s2 + $0x40] sm:$0xff]  ;;  %v22_v44 = vld [vmem:[%s554_s0 + $0x18] sm:$0xff] }
   0x9   :  { %v49_v28 = vmax.f32 %v37_v22, 0.0  ;;  %v29_v30 = vunpack.c.l.bf16 %v20_v26  ;;  %v30_v32 = vunpack.c.h.bf16 %v20_v26  ;;  %v406_v34 = vld [vmem:[%s553_s2 + $0x48] sm:$0xff]  ;;  %v38_v36 = vmax.f32 %v26_v29, 0.0  ;;  %v274_v56 = vld [vmem:[%s555_s3] sm:$0xf] }
   0xa   :  { %209 = vmatpush.bf16.msra.mxu0 %v402_v10  ;;  %393 = vmatmul.msk.bf16.vlgmr.msra.gmra.mxu2 %vm200_vm0, %v52_v14  ;;  %v39_v38 = vmax.f32 %v27_v31, 0.0  ;;  %v24_v45 = vld [vmem:[%s554_s0 + $0x24] sm:$0xff]  ;;  %v32_v46 = vunpack.c.l.bf16 %v22_v44  ;;  %v33_v48 = vunpack.c.h.bf16 %v22_v44  ;;  %v284_v57 = vsel %vm282_vm1, %v274_v56, 0 }
   0xb   :  { %228 = vmatpush.bf16.msra.mxu1 %v410_v11  ;;  %v55_v35 = vpack.c.bf16 %v49_v28, %v46_v27  ;;  %v41_v37 = vmax.f32 %v29_v30, 0.0  ;;  %v42_v39 = vmax.f32 %v30_v32, 0.0  ;;  %v35_v47 = vunpack.c.l.bf16 %v24_v45  ;;  %293 = vmatpush.bf16.msra.mxu3 %v284_v57 }
   0xc   :  { %v36_v49 = vunpack.c.h.bf16 %v24_v45  ;;  %v44_v50 = vmax.f32 %v32_v46, 0.0  ;;  %v45_v52 = vmax.f32 %v33_v48, 0.0 }
   0xd   :  { %v50_v42 = vpack.c.bf16 %v41_v37, %v38_v36  ;;  %v51_v43 = vpack.c.bf16 %v42_v39, %v39_v38  ;;  %v47_v51 = vmax.f32 %v35_v47, 0.0 }
   0xe   :  { %210 = vmatpush.bf16.msra.mxu0 %v401_v15  ;;  %v48_v53 = vmax.f32 %v36_v49, 0.0 }
   0xf   :  { %229 = vmatpush.bf16.msra.mxu1 %v409_v16  ;;  %v53_v54 = vpack.c.bf16 %v47_v51, %v44_v50 }
  0x10   :  { %v54_v55 = vpack.c.bf16 %v48_v53, %v45_v52 }
  0x12   :  { %211 = vmatpush.bf16.msra.mxu0 %v400_v19 }
  0x13   :  { %230 = vmatpush.bf16.msra.mxu1 %v408_v20  ;;  %v270_v20 = vld [vmem:[%s556_s1] sm:$0xff] }
  0x16   :  { %212 = vmatpush.bf16.msra.mxu0 %v399_v23 }
  0x17   :  { %231 = vmatpush.bf16.msra.mxu1 %v407_v24 }
  0x1a   :  { %213 = vmatpush.bf16.msra.mxu0 %v398_v33  ;;  %394 = vmatmul.msk.bf16.gmra.mxu2 %vm200_vm0, %v55_v35 }
  0x1b   :  { %232 = vmatpush.bf16.msra.mxu1 %v406_v34 }
  0x1e   :  { %214 = vmatpush.bf16.msra.mxu0 %v397_v40 }
  0x1f   :  { %233 = vmatpush.bf16.msra.mxu1 %v405_v41 }
  0x21   :  { %215 = vmatmul.bf16.vlgmr.msra.gmra.mxu0 %v50_v42 }
  0x22   :  { %234 = vmatmul.bf16.vlgmr.msra.gmra.mxu1 %v51_v43 }
  0x31   :  { %220 = vmatmul.bf16.gmra.mxu0 %v53_v54 }
  0x32   :  { %239 = vmatmul.bf16.gmra.mxu1 %v54_v55 }
  0x8d   :  { %v254_v58 = vpop.f32.mrf.mxu2 }
  0x95   :  { %v256_v62 = vpop.f32.mrf.mxu2 }
  0x9d   :  { %v259_v6 = vpop.f32.mrf.mxu2 }
  0x9e   :  { %v216_v59 = vpop.f32.mrf.mxu0 }
  0x9f   :  { %v235_v60 = vpop.f32.mrf.mxu1 }
  0xa0   :  { %v236_v61 = vadd.f32 %v235_v60, %v216_v59 }
  0xa2   :  { %v255_v1 = vadd.f32 %v254_v58, %v236_v61 }
  0xa4   :  { %v264_v4 = vmax.f32 %v255_v1, 0.0 }
  0xa5   :  { %v261_v15 = vpop.f32.mrf.mxu2 }
  0xa6   :  { %v218_v63 = vpop.f32.mrf.mxu0 }
  0xa7   :  { %v237_v0 = vpop.f32.mrf.mxu1 }
  0xa8   :  { %v238_v2 = vadd.f32 %v237_v0, %v218_v63 }
  0xaa   :  { %v257_v3 = vadd.f32 %v256_v62, %v238_v2 }
  0xac   :  { %v265_v5 = vmax.f32 %v257_v3, 0.0 }
  0xae   :  { %v268_v7 = vpack.c.bf16 %v265_v5, %v264_v4  ;;  %v221_v8 = vpop.f32.mrf.mxu0 }
  0xaf   :  { %v240_v9 = vpop.f32.mrf.mxu1 }
  0xb0   :  { %395 = vmatmul.msk.bf16.vlgmr.msra.gmra.mxu3 %vm275_vm2, %v268_v7  ;;  %v241_v10 = vadd.f32 %v240_v9, %v221_v8 }
  0xb2   :  { %v260_v13 = vadd.f32 %v259_v6, %v241_v10 }
  0xb4   :  { %v266_v17 = vmax.f32 %v260_v13, 0.0 }
  0xb6   :  { %v223_v11 = vpop.f32.mrf.mxu0 }
  0xb7   :  { %v242_v12 = vpop.f32.mrf.mxu1 }
  0xb8   :  { %v243_v14 = vadd.f32 %v242_v12, %v223_v11 }
  0xba   :  { %v262_v16 = vadd.f32 %v261_v15, %v243_v14 }
  0xbc   :  { %v267_v18 = vmax.f32 %v262_v16, 0.0 }
  0xbe   :  { %v269_v19 = vpack.c.bf16 %v267_v18, %v266_v17 }
  0xc0   :  { %396 = vmatmul.msk.bf16.gmra.mxu3 %vm275_vm2, %v269_v19 }
 0x133   :  { %v295_v21 = vpop.f32.mrf.mxu3 }
 0x134   :  { %v305_v22 = vadd.f32 %v295_v21, %v270_v20 }
 0x136   :  { %v309_v23 = vmax.f32 %v305_v22, 0.0 }
 0x138   :  { %313 = vst.msk [vmem:[%s557_s4] sm:$0xff] %vm200_vm0, %v309_v23 }
 0x13b   :  { %v297_v25 = vpop.f32.mrf.mxu3 }
 0x13f   :  { %v271_v24 = vld [vmem:[%s556_s1 + $0x8] sm:$0xff] }
 0x140   :  { %v306_v26 = vadd.f32 %v297_v25, %v271_v24 }
 0x142   :  { %v310_v27 = vmax.f32 %v306_v26, 0.0 }
 0x143   :  { %v300_v29 = vpop.f32.mrf.mxu3 }
 0x144   :  { %314 = vst.msk [vmem:[%s557_s4 + $0x8] sm:$0xff] %vm200_vm0, %v310_v27 }
 0x14b   :  { %v272_v28 = vld [vmem:[%s556_s1 + $0x10] sm:$0xff]  ;;  %v302_v33 = vpop.f32.mrf.mxu3 }
 0x14c   :  { %v307_v30 = vadd.f32 %v300_v29, %v272_v28 }
 0x14e   :  { %v311_v31 = vmax.f32 %v307_v30, 0.0 }
 0x150   :  { %315 = vst.msk [vmem:[%s557_s4 + $0x10] sm:$0xff] %vm200_vm0, %v311_v31 }
 0x157   :  { %v273_v32 = vld [vmem:[%s556_s1 + $0x18] sm:$0xff] }
 0x158   :  { %v308_v34 = vadd.f32 %v302_v33, %v273_v32 }
 0x15a   :  { %v312_v35 = vmax.f32 %v308_v34, 0.0 }
 0x15c   :  { %316 = vst.msk [vmem:[%s557_s4 + $0x18] sm:$0xff] %vm200_vm0, %v312_v35 }

</bundles_post_ra>
